<compile_context>
chip_gen: v6e
topology: v6e:2x2x1
jax: 0.10.0
libtpu: 0.0.40
codegen_flags: <defaults>
</compile_context>

<pallas_src>
import numpy as np

import jax
import jax.numpy as jnp
from jax.experimental import pallas as pl
from jax.experimental.pallas import tpu as pltpu


def _cdiv(a, b):
    return -(-a // b)


def _round_up(a, m):
    return _cdiv(a, m) * m


def _matmul_kernel(a_ref, b_ref, o_ref):
    """o = a @ b on the MXU (f32 accumulation), cast to the output dtype."""
    o_ref[...] = jnp.dot(
        a_ref[...], b_ref[...], preferred_element_type=jnp.float32
    ).astype(o_ref.dtype)


def _build_weights(L, kernel_size, stride, pad, L_out):
    """Banded (L_out, L) pooling matrix: replicate padding, stride and the
    1/kernel_size scale are folded into static weights."""
    w = np.zeros((L_out, L), dtype=np.float32)
    inv_k = 1.0 / kernel_size
    for j in range(L_out):
        base = j * stride - pad
        for t in range(kernel_size):
            i = min(max(base + t, 0), L - 1)
            w[j, i] += inv_k
    return w


def _vmem_params():
    """(per-step block budget, vmem_limit_bytes) per TPU generation."""
    try:
        cap = pltpu.get_tpu_info().vmem_capacity_bytes
    except Exception:
        cap = 64 * 1024 * 1024
    if cap <= 64 * 1024 * 1024:          # v7x-class: 64 MiB per TensorCore
        return 12 * 1024 * 1024, 40 * 1024 * 1024
    return 20 * 1024 * 1024, 64 * 1024 * 1024   # v5e / v6e: 128 MiB physical


def _pick_row_tile(R, L, L_out, itemsize, budget_bytes, w_bytes):
    # Double-buffered input + output blocks per row; W is resident (single).
    per_row = 2 * L * itemsize + 2 * L_out * itemsize
    avail = max(budget_bytes - w_bytes, 8 * per_row)
    rt = (avail // per_row) // 8 * 8
    rt = int(max(8, min(rt, _round_up(R, 8))))
    # Keep at least two parallel grid steps (second TensorCore on v7x).
    if rt >= R and R > 8:
        rt = int(_round_up(_cdiv(R, 2), 8))
    return rt


def _pick_c_tile(C):
    if C % 128 == 0:
        for cand in (512, 256, 128):
            if C % cand == 0:
                return cand
    return C


def moving_avg(x, kernel_size, stride):
    """x: (B, L, C). Returns (B, L_out, C); same semantics as the PyTorch
    moving_avg module (replicate pad + AvgPool1d over the time axis)."""
    assert kernel_size >= 1 and stride >= 1
    B, L, C = x.shape
    pad = (kernel_size - 1) // 2
    L_out = (L + 2 * pad - kernel_size) // stride + 1
    assert L_out >= 1, "pooling window does not fit the (padded) sequence"

    budget, vmem_limit = _vmem_params()
    w_ol = _build_weights(L, kernel_size, stride, pad, L_out)   # (L_out, L)
    w_bytes = w_ol.size * 4
    # TODO(synk): for very long sequences (L * L_out * 4 >> VMEM budget) tile
    # the contraction over L with an accumulator instead of a resident W.

    if C < 128:
        # Channels-first: rows = (B, C) flattened; lane axis = L / L_out.
        w_lo = jnp.asarray(np.ascontiguousarray(w_ol.T))        # (L, L_out)
        R = B * C
        rt = _pick_row_tile(R, L, L_out, x.dtype.itemsize, budget, w_bytes)
        R_pad = int(_round_up(R, rt))
        x_rows = jnp.transpose(x, (0, 2, 1)).reshape(R, L)
        if R_pad != R:
            x_rows = jnp.pad(x_rows, ((0, R_pad - R), (0, 0)))
        out_rows = pl.pallas_call(
            _matmul_kernel,
            out_shape=jax.ShapeDtypeStruct((R_pad, L_out), x.dtype),
            grid_spec=pltpu.PrefetchScalarGridSpec(
                num_scalar_prefetch=0,
                grid=(R_pad // rt,),
                in_specs=[
                    pl.BlockSpec((rt, L), lambda i: (i, 0)),
                    pl.BlockSpec((L, L_out), lambda i: (0, 0)),   # resident W
                ],
                out_specs=pl.BlockSpec((rt, L_out), lambda i: (i, 0)),
            ),
            compiler_params=pltpu.CompilerParams(
                dimension_semantics=("parallel",),
                vmem_limit_bytes=vmem_limit,
            ),
        )(x_rows, w_lo)
        out = out_rows[:R].reshape(B, C, L_out)
        return jnp.transpose(out, (0, 2, 1))

    # C >= 128: channels-last layout is already lane-dense; W stays resident
    # and each grid step computes (L_out, L) @ (L, c_tile) for one batch row.
    c_tile = _pick_c_tile(C)
    w_res = jnp.asarray(w_ol)                                    # (L_out, L)
    return pl.pallas_call(
        _matmul_kernel,
        out_shape=jax.ShapeDtypeStruct((B, L_out, C), x.dtype),
        grid_spec=pltpu.PrefetchScalarGridSpec(
            num_scalar_prefetch=0,
            grid=(B, C // c_tile),
            in_specs=[
                pl.BlockSpec((L_out, L), lambda b, c: (0, 0)),        # resident W
                pl.BlockSpec((None, L, c_tile), lambda b, c: (b, 0, c)),
            ],
            out_specs=pl.BlockSpec((None, L_out, c_tile), lambda b, c: (b, 0, c)),
        ),
        compiler_params=pltpu.CompilerParams(
            dimension_semantics=("parallel", "parallel"),
            vmem_limit_bytes=vmem_limit,
        ),
    )(w_res, x)


if __name__ == "__main__":
    key = jax.random.PRNGKey(0)
    k1, k2 = jax.random.split(key)

    def reference(x, kernel_size, stride):
        # Pure-JAX mirror of the PyTorch forward (replicate pad + AvgPool1d).
        pad = (kernel_size - 1) // 2
        if pad > 0:
            front = jnp.repeat(x[:, :1, :], pad, axis=1)
            end = jnp.repeat(x[:, -1:, :], pad, axis=1)
            xp = jnp.concatenate([front, x, end], axis=1)
        else:
            xp = x
        Lp = xp.shape[1]
        L_out = (Lp - kernel_size) // stride + 1
        span = (L_out - 1) * stride + 1
        acc = sum(xp[:, t:t + span:stride, :] for t in range(kernel_size))
        return acc / kernel_size

    # Primary case: small C -> channels-first lane-dense path.
    B, L, C = 2, 16, 8
    kernel_size, stride = 5, 1
    x = jax.random.normal(k1, (B, L, C), dtype=jnp.float32)
    out = jax.block_until_ready(moving_avg(x, kernel_size, stride))
    ref = reference(x, kernel_size, stride)
    assert out.shape == ref.shape
    assert jnp.allclose(out, ref, atol=1e-5, rtol=1e-5)

    # Strided case (stride folded into W).
    out2 = jax.block_until_ready(moving_avg(x, 5, 2))
    ref2 = reference(x, 5, 2)
    assert out2.shape == ref2.shape
    assert jnp.allclose(out2, ref2, atol=1e-5, rtol=1e-5)

    # Wide-channel case (channels-last lane-dense path).
    x_wide = jax.random.normal(k2, (2, 16, 128), dtype=jnp.float32)
    out3 = jax.block_until_ready(moving_avg(x_wide, 7, 1))
    ref3 = reference(x_wide, 7, 1)
    assert out3.shape == ref3.shape
    assert jnp.allclose(out3, ref3, atol=1e-5, rtol=1e-5)

    print("KERNEL_OK")
</pallas_src>

<mosaic_0001>
module attributes {stable_mosaic.version = 11 : i64} {
  func.func @_matmul_kernel(%arg0: i32, %arg1: memref<8x16xf32, #tpu.memory_space<vmem>>, %arg2: memref<16x16xf32, #tpu.memory_space<vmem>>, %arg3: memref<8x16xf32, #tpu.memory_space<vmem>>) attributes {dimension_semantics = [#tpu.dimension_semantics<parallel>], iteration_bounds = array<i64: 2>, scalar_prefetch = 0 : i64, scratch_operands = 0 : i64, tpu.core_type = #tpu.core_type<tc>, window_params = [{transform_indices = @transform_0, window_bounds = array<i64: 8, 16>}, {pipeline_mode = #tpu.pipeline_mode<synchronous>, transform_indices = @transform_1, window_bounds = array<i64: 16, 16>}, {transform_indices = @transform_2, window_bounds = array<i64: 8, 16>}]} {
    %c0 = arith.constant 0 : index
    %c0_0 = arith.constant 0 : index
    %0 = vector.load %arg1[%c0, %c0_0] : memref<8x16xf32, #tpu.memory_space<vmem>>, vector<8x16xf32>
    %c0_1 = arith.constant 0 : index
    %c0_2 = arith.constant 0 : index
    %1 = vector.load %arg2[%c0_1, %c0_2] : memref<16x16xf32, #tpu.memory_space<vmem>>, vector<16x16xf32>
    %cst = arith.constant dense<0.000000e+00> : vector<8x16xf32>
    %2 = tpu.matmul %0, %1, %cst {dimension_numbers = #tpu.dot_dimension_numbers<[1], [0], [0], [1], [0, 0, 1, 1], [], []>} : vector<8x16xf32>, vector<16x16xf32>, vector<8x16xf32> -> vector<8x16xf32>
    %c0_3 = arith.constant 0 : index
    %c0_4 = arith.constant 0 : index
    %3 = vector.load %arg3[%c0_3, %c0_4] : memref<8x16xf32, #tpu.memory_space<vmem>>, vector<8x16xf32>
    tpu.vector_store %arg3[%c0_3, %c0_4], %2 {strides = array<i32>} : memref<8x16xf32, #tpu.memory_space<vmem>>, vector<8x16xf32>,
    return
  }
  func.func @transform_0(%arg0: i32) -> (i32, i32) {
    %c0_i32 = arith.constant 0 : i32
    %c0_i32_0 = arith.constant 0 : i32
    return %arg0, %c0_i32 : i32, i32
  }
  func.func @transform_1(%arg0: i32) -> (i32, i32) {
    %c0_i32 = arith.constant 0 : i32
    %c0_i32_0 = arith.constant 0 : i32
    %c0_i32_1 = arith.constant 0 : i32
    return %c0_i32, %c0_i32_0 : i32, i32
  }
  func.func @transform_2(%arg0: i32) -> (i32, i32) {
    %c0_i32 = arith.constant 0 : i32
    %c0_i32_0 = arith.constant 0 : i32
    return %arg0, %c0_i32 : i32, i32
  }
}

</mosaic_0001>

<bundles_post_ra>
// kernel: tpu_custom_call.1
= control target key start
LH: loop header
LB: loop body
LE: loop exit
PB: predicated region body
PF: predicated region fallthrough
CT: control target
= control target key end

     0   :  { %7 = vsyncpa [#allocation3], 0  ;;  %s744_s0 = inlined_call_operand.hbm [shape: f32[16,16], index: 0, kind: input, shape index: {}]   ;;  %s745_s1 = inlined_call_operand.hbm [shape: f32[16,16], index: 1, kind: input, shape index: {}]   ;;  %s746_s2 = inlined_call_operand.hbm [shape: f32[16,16], index: 2, kind: output, shape index: {}]  }
   0x1   :  { %9 = vsyncpa [#allocation3 + $0x1], 0 }
   0x2   :  { %10 = vsyncpa [#allocation6], 0 }
   0x3   :  { %11 = vsyncpa [#allocation4], 0 }
   0x4   :  { %13 = vsyncpa [#allocation4 + $0x1], 0  ;;  %s578_s9 = smov 0   ;;  %s580_s10 = smov 0  }
   0x5   :  { %s582_s11 = smov 0   ;;  %s584_s12 = smov 0  }
   0x6 LB: > { %s599_s13 = sadd.s32 4294967295, %s554_s12   ;;  %s346_s14 = sadd.s32 4294967294, %s554_s12   ;;  %s554_s12 = sphi %s584_s12, %s768_s12   ;;  %s550_s11 = sphi %s582_s11, %s767_s11   ;;  %s546_s10 = sphi %s580_s10, %s766_s10   ;;  %s542_s9 = sphi %s578_s9, %s765_s9  }
   0x7   : > { %p39_p0 = scmp.ne.s32.totalorder %s546_s10, %s542_s9  ;;  %p747_p1 = scmp.eq.s32.totalorder %s599_s13, 0 }
   0x8   : > { %p90_p3 = scmp.eq.s32.totalorder %s346_s14, 1  ;;  %p347_p5 = scmp.ge.s32.totalorder %s554_s12, 1 }
   0x9   : > { %p608_p4 = por %p747_p1, %p39_p0  ;;  %p97_p7 = scmp.lt.s32.totalorder %s554_s12, 3 }
   0xa   : > { %p613_p6 = por %p90_p3, %p39_p0  ;;  %s556_s18 = smov [#allocation5]  }
   0xb   : > { %s751_s15 = scalar_select %p608_p4, 1, 0 }
   0xc   : > { %s752_s16 = scalar_select %p613_p6, 1, 0 }
   0xd   : > { %p618_p8 = pnand %p347_p5, %p97_p7  ;;  %s109_s19 = sshll.u32 %s556_s18, 4  ;;  %s110_s19 = int_to_ptr.vmem [resolvable:$true] %s109_s19 }
   0xe   : > { %s632_s21 = sadd.s32 1, %s554_s12   ;;  %s26_s22 = sadd.s32 1, %s550_s11 }
   0xf   : > { %s753_s17 = scalar_select %p618_p8, 1, 0 }
  0x10   : > { %p379_p9 = pneg %p618_p8  ;;  %s23_s23 = ssub.s32 %s554_s12, %s632_s21 }
  0x11   : > { %s443_s24 = scalar_lea.vmem %s110_s19, 256  ;;  %p451_p5 = scmp.lt.s32.totalorder %s110_s19, %s110_s19 }
  0x12   : > { %p627_p11 = pnand %p379_p9, %p747_p1  ;;  %p444_p13 = scmp.ne.s32.totalorder %s110_s19, %s443_s24 }
  0x13   : > { %p452_p7 = scmp.lt.s32.totalorder %s443_s24, %s443_s24 }
  0x14   : > { %p434_p12 = pneg %p627_p11 }
  0x15   : > { %p453_p10 = por %p452_p7, %p451_p5 }
  0x16   : > { %p446_p0 = pnand %p444_p13, %p434_p12 }
  0x18   : > { %p447_p3 = pneg %p446_p0 }
  0x1a   : > { %p454_p2 = pnand %p453_p10, %p447_p3 }
  0x1c   : > { %457 = shalt.err (!%p454_p2)
}
  0x1d   : > { %s557_s25 = smov 128   ;;  %s558_s26 = smov 8  }
  0x1e   : > { %382 = dma.hbm_to_vmem [thread:$0]  (!%p627_p11), %s745_s1, 256, %s110_s19, [#allocation6], %s557_s25, %s557_s25, %s558_s26  }
  0x1f   : > { %p24_p9 = scmp.eq.s32.totalorder %s23_s23, 0  ;;  %p33_p12 = scmp.ne.s32.totalorder %s550_s11, %s546_s10 }
  0x20   : > { %p34_p10 = scmp.eq.s32.totalorder %s554_s12, 0  ;;  %p392_p2 = scmp.lt.s32.totalorder %s554_s12, 2 }
  0x21   : > { %s649_s29 = scalar_select %p24_p9, %s550_s11, %s26_s22  }
  0x22   : > { %p35_p13 = por %p34_p10, %p33_p12  ;;  %p755_p0 = scmp.eq.s32.totalorder %s599_s13, 1 }
  0x23   : > { %s123_s3 = sand.u32 1, %s550_s11   ;;  %s351_s4 = sshll.u32 %s554_s12, 7 }
  0x24   : > { %p653_p3 = por %p755_p0, %p33_p12  ;;  %s350_s5 = sshll.u32 %s123_s3, 3 }
  0x25   : > { %s662_s8 = scalar_lea.hbm %s744_s0, %s351_s4  ;;  %s127_s14 = scalar_lea.vmem [#allocation2], %s350_s5 }
  0x26   : > { %s756_s30 = scalar_select %p653_p3, 1, 0 }
  0x27   : > { %s134_s18 = sshll.u32 %s127_s14, 4  ;;  %p664_p11 = pnand %p392_p2, %p35_p13  ;;  %s135_s18 = int_to_ptr.vmem [resolvable:$true] %s134_s18 }
  0x28   : > { %s124_s20 = scalar_lea.sflag [#allocation3], %s123_s3  ;;  %s458_s22 = scalar_lea.hbm %s662_s8, 128 }
  0x29   : > { %p459_p5 = scmp.ne.s32.totalorder %s662_s8, %s458_s22  ;;  %p460_p7 = pneg %p664_p11 }
  0x2a   : > { %s463_s25 = scalar_lea.hbm %s744_s0, 256  ;;  %p464_p10 = scmp.lt.s32.totalorder %s662_s8, %s744_s0 }
  0x2b   : > { %p461_p9 = pnand %p460_p7, %p459_p5  ;;  %p465_p2 = scmp.lt.s32.totalorder %s463_s25, %s458_s22 }
  0x2d   : > { %p462_p12 = pneg %p461_p9  ;;  %p466_p13 = por %p465_p2, %p464_p10 }
  0x2f   : > { %p467_p0 = pnand %p466_p13, %p462_p12 }
  0x31   : > { %470 = shalt.err (!%p467_p0)
}
  0x32   : > { %s471_s28 = scalar_lea.vmem %s135_s18, 128  ;;  %s559_s3 = smov [#allocation2]  }
  0x33   : > { %p472_p1 = scmp.ne.s32.totalorder %s135_s18, %s471_s28  ;;  %s476_s4 = sshll.u32 %s559_s3, 4  ;;  %s477_s4 = int_to_ptr.vmem [resolvable:$false] %s476_s4 }
  0x34   : > { %s478_s5 = scalar_lea.vmem %s477_s4, 256  ;;  %p479_p5 = scmp.lt.s32.totalorder %s135_s18, %s477_s4 }
  0x35   : > { %p474_p6 = pnand %p472_p1, %p460_p7  ;;  %p480_p9 = scmp.lt.s32.totalorder %s478_s5, %s471_s28 }
  0x37   : > { %p475_p3 = pneg %p474_p6  ;;  %p481_p4 = por %p480_p9, %p479_p5 }
  0x39   : > { %p482_p8 = pnand %p481_p4, %p475_p3 }
  0x3b   : > { %485 = shalt.err (!%p482_p8)
}
  0x3c   : > { %386 = dma.hbm_to_vmem [thread:$0]  (!%p664_p11), %s662_s8, 128, %s135_s18, %s124_s20  }
  0x3d   : > { %p758_p12 = scmp.ne.s32.totalorder %s753_s17, 0 }
  0x3e   : > { %s685_s6 = sand.u32 (!%p758_p12), 1, %s546_s10   ;;  %p759_p1 = scmp.ne.s32.totalorder (!%p758_p12), %s751_s15, 0 }
  0x3f   : > { %143 = sbr.rel (%p758_p12) target bundleno = 284 (0x11c), region = 28  ;;  %s353_s7 = sshll.u32 (!%p758_p12), %s685_s6, 3 }
  0x40   : > { %s146_s14 = scalar_lea.sflag (!%p758_p12), [#allocation3], %s685_s6  ;;  %s149_s22 = scalar_lea.vmem (!%p758_p12), [#allocation2], %s353_s7 }
  0x44   : > { %529 = dma.done.wait (%p759_p1), %s146_s14, 128  }
  0x45   : > { %531 = vsyncadd (%p759_p1), %s146_s14, 4294967168  ;;  %p760_p4 = scmp.eq.s32.totalorder %s599_s13, 0 }
  0x47   : > { %533 = dma.done.wait (%p760_p4), [#allocation6], 256   ;;  %p761_p6 = pmov %p760_p4 }
  0x48   : > { %v560_v0 = vmov 0.0   ;;  %vm561_vm0 = vmmov 0   ;;  %v176_v1 = vld [vmem:[#allocation5 + $0x8] sm:$0xff]  ;;  %v175_v2 = vld [vmem:[#allocation5] sm:$0xff]  ;;  %v174_v3 = vld [vmem:[%s149_s22] sm:$0xff]  ;;  %vm177_vm1 = vcmask 130048  }
  0x49   : > { %535 = vsyncadd (%p761_p6), [#allocation6], 4294967040  ;;  %364 = vmatprep.subr.mxu0 %v560_v0  ;;  %368 = vmatprep.mubr.msk.f32.mxu0 %vm561_vm0, %v560_v0  ;;  %s358_s15 = sshll.u32 %s599_s13, 7  ;;  %s173_s17 = scalar_lea.vmem [#allocation7], %s353_s7 }
  0x4a   : > { %365 = vmatpush3.msra.mxu0 %v176_v1  ;;  %s266_s8 = sshll.u32 %s173_s17, 4  ;;  %s701_s20 = scalar_lea.hbm %s746_s2, %s358_s15  ;;  %s703_s8 = int_to_ptr.vmem [resolvable:$true] %s266_s8 }
  0x4b   : > { %366 = vmatprep.subr.mxu0 %v560_v0  ;;  %s253_s23 = scalar_lea.sflag [#allocation4], %s685_s6  ;;  %s486_s24 = scalar_lea.vmem %s703_s8, 128 }
  0x4c   : > { %367 = vmatpush3.msra.mxu0 %v175_v2  ;;  %p487_p8 = scmp.ne.s32.totalorder %s703_s8, %s486_s24  ;;  %p762_p3 = scmp.ne.s32.totalorder %s756_s30, 0 }
  0x4d   : > { %369 = vmatmul.mubr.msk.f32.vlgmr.msra.gmra.mxu0 %vm177_vm1, %v174_v3  ;;  %s562_s13 = smov [#allocation7]  }
  0x4e   : > { %p488_p11 = pnand %p487_p8, %p762_p3  ;;  %s490_s25 = sshll.u32 %s562_s13, 4  ;;  %s491_s25 = int_to_ptr.vmem [resolvable:$false] %s490_s25 }
  0x4f   : > { %s492_s26 = scalar_lea.vmem %s491_s25, 256  ;;  %p493_p10 = scmp.lt.s32.totalorder %s703_s8, %s491_s25 }
  0x50   : > { %p489_p7 = pneg %p488_p11  ;;  %p494_p2 = scmp.lt.s32.totalorder %s492_s26, %s486_s24 }
  0x52   : > { %p495_p13 = por %p494_p2, %p493_p10 }
  0x54   : > { %p496_p0 = pnand %p495_p13, %p489_p7 }
 0x10d   : > { %v247_v4 = vpop.f32.mrf.mxu0 }
 0x10e   : > { %251 = vst.msk [vmem:[%s173_s17] sm:$0xff] %vm177_vm1, %v247_v4 }
 0x10f   : > { %v370_v5 = vpop.f32.mrf.mxu0 }
 0x110   : > { %499 = shalt.err (!%p496_p0)
}
 0x111   : > { %s500_s27 = scalar_lea.hbm %s701_s20, 128  ;;  %s504_s4 = scalar_lea.hbm %s746_s2, 256 }
 0x112   : > { %p501_p5 = scmp.ne.s32.totalorder %s701_s20, %s500_s27  ;;  %p505_p1 = scmp.lt.s32.totalorder %s701_s20, %s746_s2 }
 0x113   : > { %p506_p4 = scmp.lt.s32.totalorder %s504_s4, %s500_s27 }
 0x114   : > { %p502_p9 = pnand %p501_p5, %p762_p3 }
 0x115   : > { %p507_p6 = por %p506_p4, %p505_p1 }
 0x116   : > { %p503_p12 = pneg %p502_p9 }
 0x118   : > { %p508_p8 = pnand %p507_p6, %p503_p12 }
 0x11a   : > { %511 = shalt.err (!%p508_p8)
}
 0x11b   : > { %377 = dma.vmem_to_hbm [thread:$0]  (%p762_p3), %s703_s8, 128, %s701_s20, %s253_s23  }
 0x11c PF: > { %s278_s7 = sand.u32 1, %s542_s9   ;;  %p763_p11 = scmp.ne.s32.totalorder %s752_s16, 0 }
 0x11d   : > { %p764_p7 = scmp.ge.s32.totalorder %s554_s12, 2  ;;  %s279_s14 = scalar_lea.sflag [#allocation4], %s278_s7 }
 0x11f   : > { %p388_p10 = pnand %p764_p7, %p763_p11 }
 0x121   : > { %p389_p2 = pneg %p388_p10 }
 0x123   : > { %537 = dma.done.wait (%p389_p2), %s279_s14, 128  }
 0x124   : > { %539 = vsyncadd (%p389_p2), %s279_s14, 4294967168  ;;  %p16_p13 = scmp.ge.s32.totalorder %s632_s21, 4   ;;  %s765_s9 = smov %s546_s10 }
 0x125   : > { %s766_s10 = smov %s550_s11  ;;  %s767_s11 = smov %s649_s29 }
 0x126   : > { %s768_s12 = smov %s632_s21  ;;  %18 = sbr.rel (!%p16_p13) target bundleno = 6 (0x6), region = 77 }
 0x12b   :  { %284 = vsyncpa [#allocation3], 1 }
 0x12c   :  { %286 = vsyncpa [#allocation3 + $0x1], 1 }
 0x12d   :  { %287 = vsyncpa [#allocation6], 1 }
 0x12e   :  { %288 = vsyncpa [#allocation4], 1 }
 0x12f   :  { %290 = vsyncpa [#allocation4 + $0x1], 1 }

</bundles_post_ra>
